<compile_context>
chip_gen: v7x
topology: tpu7x:2x2x1
jax: 0.10.0
libtpu: 0.0.40
codegen_flags: <defaults>
</compile_context>

<pallas_src>
import jax
import jax.numpy as jnp
from jax.experimental import pallas as pl
from jax.experimental.pallas import tpu as pltpu


def _generator_kernel(x_ref,
                      w1_ref, b1_ref,
                      w2_ref, b2_ref,
                      w3_ref, b3_ref,
                      w4_ref, b4_ref,
                      o_ref):
    """One batch tile of the 4-layer MLP.

    Weights arrive pre-transposed as (in, out) in bf16; each matmul contracts
    directly on the MXU with f32 accumulation. Activations are re-cast to the
    weight dtype only for the next matmul; bias add / ReLU / tanh stay in f32.
    """
    cdt = w1_ref.dtype  # compute dtype for MXU inputs (bf16)
    h = x_ref[...].astype(cdt)

    # Layers 1-3: Linear + ReLU
    for w_ref, b_ref in ((w1_ref, b1_ref), (w2_ref, b2_ref), (w3_ref, b3_ref)):
        y = jnp.dot(h, w_ref[...], preferred_element_type=jnp.float32)
        y = y + b_ref[...].astype(jnp.float32)
        h = jnp.maximum(y, 0.0).astype(cdt)

    # Layer 4: Linear + Tanh (tanh in f32 on the EUP)
    y = jnp.dot(h, w4_ref[...], preferred_element_type=jnp.float32)
    y = y + b4_ref[...].astype(jnp.float32)
    o_ref[...] = jnp.tanh(y).astype(o_ref.dtype)


def generator_forward(x, params, *, compute_dtype=jnp.bfloat16,
                      lane_pad=128, batch_tile=128):
    """x: (B, S) float32. params: 4 tuples (W, b) with PyTorch layout
    W: (out=S, in=S), b: (S,)."""
    B, S = x.shape
    assert len(params) == 4

    # Lane-dense feature dim: zero-pad S up to a multiple of 128. Padded
    # columns get zero weights and zero bias, so they remain exactly zero
    # through every Linear+ReLU and through tanh; slicing the first S output
    # columns preserves the module's semantics.
    S_pad = (-(-S // lane_pad) * lane_pad) if lane_pad else S
    pad_f = S_pad - S

    flat = []
    for (w, b) in params:
        w = jnp.asarray(w, jnp.float32)
        b = jnp.asarray(b, jnp.float32).reshape(1, -1)
        # Pre-transpose once (outside the kernel) to (in, out), pad, cast bf16.
        wt = jnp.pad(w.T, ((0, pad_f), (0, pad_f))).astype(compute_dtype)
        bp = jnp.pad(b, ((0, 0), (0, pad_f)))          # bias stays f32
        flat.extend([wt, bp])

    x_pad = jnp.pad(x, ((0, 0), (0, pad_f))) if pad_f else x

    # Batch tiling: full batch if small, otherwise 128-row tiles (multiple of
    # the 8-sublane requirement). Weights/biases use a constant block index so
    # they are fetched once and stay resident across grid steps.
    TM = B if B <= batch_tile else batch_tile
    grid = (pl.cdiv(B, TM),)

    io_spec = pl.BlockSpec((TM, S_pad), lambda i: (i, 0))
    w_spec = pl.BlockSpec((S_pad, S_pad), lambda i: (0, 0))
    b_spec = pl.BlockSpec((1, S_pad), lambda i: (0, 0))
    in_specs = [io_spec]
    for _ in range(4):
        in_specs.extend([w_spec, b_spec])

    # VMEM budget: 4 bf16 weight tiles + streamed x/out tiles + f32 temps,
    # with 2x headroom; clamped to stay within every generation's physical
    # VMEM (v7x has only 64 MiB).
    weight_bytes = 4 * S_pad * S_pad * jnp.dtype(compute_dtype).itemsize
    act_bytes = 8 * TM * S_pad * 4
    vmem_limit = int(min(max(2 * (weight_bytes + act_bytes), 32 << 20), 64 << 20))

    out_pad = pl.pallas_call(
        _generator_kernel,
        out_shape=jax.ShapeDtypeStruct((B, S_pad), x.dtype),
        grid=grid,
        in_specs=in_specs,
        out_specs=io_spec,
        compiler_params=pltpu.CompilerParams(
            dimension_semantics=("parallel",),
            vmem_limit_bytes=vmem_limit),
    )(x_pad, *flat)

    return out_pad[:, :S] if pad_f else out_pad


def init_generator_params(key, size):
    """Deterministic init matching the PyTorch module's parameter shapes."""
    params = []
    bound = 1.0 / jnp.sqrt(size)  # PyTorch Linear default init range
    for i in range(4):
        kw, kb, key = jax.random.split(jax.random.fold_in(key, i), 3)
        w = jax.random.uniform(kw, (size, size), jnp.float32, -bound, bound)
        b = jax.random.uniform(kb, (size,), jnp.float32, -bound, bound)
        params.append((w, b))
    return params


def generator_reference_f32(x, params):
    """Pure-JAX full-f32 reference (PyTorch semantics)."""
    h = x
    for i, (w, b) in enumerate(params):
        h = h @ w.T + b.reshape(1, -1)
        h = jnp.tanh(h) if i == 3 else jnp.maximum(h, 0.0)
    return h


def generator_reference_bf16(x, params):
    """Pure-JAX reference mirroring the kernel's bf16-in / f32-acc math."""
    h = x
    for i, (w, b) in enumerate(params):
        h = jnp.dot(h.astype(jnp.bfloat16), w.T.astype(jnp.bfloat16),
                    preferred_element_type=jnp.float32) + b.reshape(1, -1)
        h = jnp.tanh(h) if i == 3 else jnp.maximum(h, 0.0)
    return h


if __name__ == "__main__":
    key = jax.random.PRNGKey(0)
    size = 32
    batch = 8

    kx, kp = jax.random.split(key)
    x = jax.random.normal(kx, (batch, size), jnp.float32)
    params = init_generator_params(kp, size)

    out = generator_forward(x, params)
    out = jax.block_until_ready(out)

    assert out.shape == (batch, size), out.shape
    # Tight check against a reference that uses the same bf16/f32-acc math.
    ref_bf16 = generator_reference_bf16(x, params)
    assert jnp.allclose(out, ref_bf16, atol=1e-3, rtol=1e-3), "mismatch vs bf16 reference"
    # Loose check against the full-f32 PyTorch-equivalent reference
    # (tolerance covers bf16 weight/activation rounding).
    ref_f32 = generator_reference_f32(x, params)
    assert jnp.allclose(out, ref_f32, atol=3e-2, rtol=3e-2), "mismatch vs f32 reference"

    print("KERNEL_OK")
</pallas_src>

<mosaic_0001>
module attributes {stable_mosaic.version = 11 : i64} {
  func.func @_generator_kernel(%arg0: i32, %arg1: memref<8x128xf32, #tpu.memory_space<vmem>>, %arg2: memref<128x128xbf16, #tpu.memory_space<vmem>>, %arg3: memref<1x128xf32, #tpu.memory_space<vmem>>, %arg4: memref<128x128xbf16, #tpu.memory_space<vmem>>, %arg5: memref<1x128xf32, #tpu.memory_space<vmem>>, %arg6: memref<128x128xbf16, #tpu.memory_space<vmem>>, %arg7: memref<1x128xf32, #tpu.memory_space<vmem>>, %arg8: memref<128x128xbf16, #tpu.memory_space<vmem>>, %arg9: memref<1x128xf32, #tpu.memory_space<vmem>>, %arg10: memref<8x128xf32, #tpu.memory_space<vmem>>) attributes {dimension_semantics = [#tpu.dimension_semantics<parallel>], iteration_bounds = array<i64: 1>, scalar_prefetch = 0 : i64, scratch_operands = 0 : i64, tpu.core_type = #tpu.core_type<tc>, window_params = [{transform_indices = @transform_0, window_bounds = array<i64: 8, 128>}, {pipeline_mode = #tpu.pipeline_mode<synchronous>, transform_indices = @transform_1, window_bounds = array<i64: 128, 128>}, {pipeline_mode = #tpu.pipeline_mode<synchronous>, transform_indices = @transform_2, window_bounds = array<i64: 1, 128>}, {pipeline_mode = #tpu.pipeline_mode<synchronous>, transform_indices = @transform_3, window_bounds = array<i64: 128, 128>}, {pipeline_mode = #tpu.pipeline_mode<synchronous>, transform_indices = @transform_4, window_bounds = array<i64: 1, 128>}, {pipeline_mode = #tpu.pipeline_mode<synchronous>, transform_indices = @transform_5, window_bounds = array<i64: 128, 128>}, {pipeline_mode = #tpu.pipeline_mode<synchronous>, transform_indices = @transform_6, window_bounds = array<i64: 1, 128>}, {pipeline_mode = #tpu.pipeline_mode<synchronous>, transform_indices = @transform_7, window_bounds = array<i64: 128, 128>}, {pipeline_mode = #tpu.pipeline_mode<synchronous>, transform_indices = @transform_8, window_bounds = array<i64: 1, 128>}, {transform_indices = @transform_9, window_bounds = array<i64: 8, 128>}]} {
    %c0 = arith.constant 0 : index
    %c0_0 = arith.constant 0 : index
    %0 = vector.load %arg1[%c0, %c0_0] : memref<8x128xf32, #tpu.memory_space<vmem>>, vector<8x128xf32>
    %1 = arith.truncf %0 : vector<8x128xf32> to vector<8x128xbf16>
    %c0_1 = arith.constant 0 : index
    %c0_2 = arith.constant 0 : index
    %2 = vector.load %arg2[%c0_1, %c0_2] : memref<128x128xbf16, #tpu.memory_space<vmem>>, vector<128x128xbf16>
    %cst = arith.constant dense<0.000000e+00> : vector<8x128xf32>
    %3 = tpu.matmul %1, %2, %cst {dimension_numbers = #tpu.dot_dimension_numbers<[1], [0], [0], [1], [0, 0, 1, 1], [], []>} : vector<8x128xbf16>, vector<128x128xbf16>, vector<8x128xf32> -> vector<8x128xf32>
    %c0_3 = arith.constant 0 : index
    %c0_4 = arith.constant 0 : index
    %4 = vector.load %arg3[%c0_3, %c0_4] : memref<1x128xf32, #tpu.memory_space<vmem>>, vector<1x128xf32>
    %5 = vector.broadcast %4 : vector<1x128xf32> to vector<8x128xf32>
    %6 = arith.addf %3, %5 : vector<8x128xf32>
    %cst_5 = arith.constant 0.000000e+00 : f32
    %7 = vector.broadcast %cst_5 : f32 to vector<8x128xf32>
    %8 = arith.maximumf %6, %7 : vector<8x128xf32>
    %9 = arith.truncf %8 : vector<8x128xf32> to vector<8x128xbf16>
    %c0_6 = arith.constant 0 : index
    %c0_7 = arith.constant 0 : index
    %10 = vector.load %arg4[%c0_6, %c0_7] : memref<128x128xbf16, #tpu.memory_space<vmem>>, vector<128x128xbf16>
    %cst_8 = arith.constant dense<0.000000e+00> : vector<8x128xf32>
    %11 = tpu.matmul %9, %10, %cst_8 {dimension_numbers = #tpu.dot_dimension_numbers<[1], [0], [0], [1], [0, 0, 1, 1], [], []>} : vector<8x128xbf16>, vector<128x128xbf16>, vector<8x128xf32> -> vector<8x128xf32>
    %c0_9 = arith.constant 0 : index
    %c0_10 = arith.constant 0 : index
    %12 = vector.load %arg5[%c0_9, %c0_10] : memref<1x128xf32, #tpu.memory_space<vmem>>, vector<1x128xf32>
    %13 = vector.broadcast %12 : vector<1x128xf32> to vector<8x128xf32>
    %14 = arith.addf %11, %13 : vector<8x128xf32>
    %cst_11 = arith.constant 0.000000e+00 : f32
    %15 = vector.broadcast %cst_11 : f32 to vector<8x128xf32>
    %16 = arith.maximumf %14, %15 : vector<8x128xf32>
    %17 = arith.truncf %16 : vector<8x128xf32> to vector<8x128xbf16>
    %c0_12 = arith.constant 0 : index
    %c0_13 = arith.constant 0 : index
    %18 = vector.load %arg6[%c0_12, %c0_13] : memref<128x128xbf16, #tpu.memory_space<vmem>>, vector<128x128xbf16>
    %cst_14 = arith.constant dense<0.000000e+00> : vector<8x128xf32>
    %19 = tpu.matmul %17, %18, %cst_14 {dimension_numbers = #tpu.dot_dimension_numbers<[1], [0], [0], [1], [0, 0, 1, 1], [], []>} : vector<8x128xbf16>, vector<128x128xbf16>, vector<8x128xf32> -> vector<8x128xf32>
    %c0_15 = arith.constant 0 : index
    %c0_16 = arith.constant 0 : index
    %20 = vector.load %arg7[%c0_15, %c0_16] : memref<1x128xf32, #tpu.memory_space<vmem>>, vector<1x128xf32>
    %21 = vector.broadcast %20 : vector<1x128xf32> to vector<8x128xf32>
    %22 = arith.addf %19, %21 : vector<8x128xf32>
    %cst_17 = arith.constant 0.000000e+00 : f32
    %23 = vector.broadcast %cst_17 : f32 to vector<8x128xf32>
    %24 = arith.maximumf %22, %23 : vector<8x128xf32>
    %25 = arith.truncf %24 : vector<8x128xf32> to vector<8x128xbf16>
    %c0_18 = arith.constant 0 : index
    %c0_19 = arith.constant 0 : index
    %26 = vector.load %arg8[%c0_18, %c0_19] : memref<128x128xbf16, #tpu.memory_space<vmem>>, vector<128x128xbf16>
    %cst_20 = arith.constant dense<0.000000e+00> : vector<8x128xf32>
    %27 = tpu.matmul %25, %26, %cst_20 {dimension_numbers = #tpu.dot_dimension_numbers<[1], [0], [0], [1], [0, 0, 1, 1], [], []>} : vector<8x128xbf16>, vector<128x128xbf16>, vector<8x128xf32> -> vector<8x128xf32>
    %c0_21 = arith.constant 0 : index
    %c0_22 = arith.constant 0 : index
    %28 = vector.load %arg9[%c0_21, %c0_22] : memref<1x128xf32, #tpu.memory_space<vmem>>, vector<1x128xf32>
    %29 = vector.broadcast %28 : vector<1x128xf32> to vector<8x128xf32>
    %30 = arith.addf %27, %29 : vector<8x128xf32>
    %31 = math.tanh %30 : vector<8x128xf32>
    %c0_23 = arith.constant 0 : index
    %c0_24 = arith.constant 0 : index
    %32 = vector.load %arg10[%c0_23, %c0_24] : memref<8x128xf32, #tpu.memory_space<vmem>>, vector<8x128xf32>
    tpu.vector_store %arg10[%c0_23, %c0_24], %31 {strides = array<i32>} : memref<8x128xf32, #tpu.memory_space<vmem>>, vector<8x128xf32>,
    return
  }
  func.func @transform_0(%arg0: i32) -> (i32, i32) {
    %c0_i32 = arith.constant 0 : i32
    %c0_i32_0 = arith.constant 0 : i32
    return %arg0, %c0_i32 : i32, i32
  }
  func.func @transform_1(%arg0: i32) -> (i32, i32) {
    %c0_i32 = arith.constant 0 : i32
    %c0_i32_0 = arith.constant 0 : i32
    %c0_i32_1 = arith.constant 0 : i32
    return %c0_i32, %c0_i32_0 : i32, i32
  }
  func.func @transform_2(%arg0: i32) -> (i32, i32) {
    %c0_i32 = arith.constant 0 : i32
    %c0_i32_0 = arith.constant 0 : i32
    %c0_i32_1 = arith.constant 0 : i32
    return %c0_i32, %c0_i32_0 : i32, i32
  }
  func.func @transform_3(%arg0: i32) -> (i32, i32) {
    %c0_i32 = arith.constant 0 : i32
    %c0_i32_0 = arith.constant 0 : i32
    %c0_i32_1 = arith.constant 0 : i32
    return %c0_i32, %c0_i32_0 : i32, i32
  }
  func.func @transform_4(%arg0: i32) -> (i32, i32) {
    %c0_i32 = arith.constant 0 : i32
    %c0_i32_0 = arith.constant 0 : i32
    %c0_i32_1 = arith.constant 0 : i32
    return %c0_i32, %c0_i32_0 : i32, i32
  }
  func.func @transform_5(%arg0: i32) -> (i32, i32) {
    %c0_i32 = arith.constant 0 : i32
    %c0_i32_0 = arith.constant 0 : i32
    %c0_i32_1 = arith.constant 0 : i32
    return %c0_i32, %c0_i32_0 : i32, i32
  }
  func.func @transform_6(%arg0: i32) -> (i32, i32) {
    %c0_i32 = arith.constant 0 : i32
    %c0_i32_0 = arith.constant 0 : i32
    %c0_i32_1 = arith.constant 0 : i32
    return %c0_i32, %c0_i32_0 : i32, i32
  }
  func.func @transform_7(%arg0: i32) -> (i32, i32) {
    %c0_i32 = arith.constant 0 : i32
    %c0_i32_0 = arith.constant 0 : i32
    %c0_i32_1 = arith.constant 0 : i32
    return %c0_i32, %c0_i32_0 : i32, i32
  }
  func.func @transform_8(%arg0: i32) -> (i32, i32) {
    %c0_i32 = arith.constant 0 : i32
    %c0_i32_0 = arith.constant 0 : i32
    %c0_i32_1 = arith.constant 0 : i32
    return %c0_i32, %c0_i32_0 : i32, i32
  }
  func.func @transform_9(%arg0: i32) -> (i32, i32) {
    %c0_i32 = arith.constant 0 : i32
    %c0_i32_0 = arith.constant 0 : i32
    return %arg0, %c0_i32 : i32, i32
  }
}

</mosaic_0001>

<bundles_post_ra>
// kernel: tpu_custom_call.1
= control target key start
LH: loop header
LB: loop body
LE: loop exit
PB: predicated region body
PF: predicated region fallthrough
CT: control target
= control target key end

     0   :  { %14 = vsyncpa [#allocation3], 0  ;;  %s1103_s0 = inlined_call_operand.hbm [shape: f32[8,128], index: 0, kind: input, shape index: {}]   ;;  %s1104_s1 = inlined_call_operand.hbm [shape: bf16[128,128], index: 1, kind: input, shape index: {}]   ;;  %s1105_s2 = inlined_call_operand.vmem [shape: f32[1,128], index: 2, kind: input, shape index: {}]   ;;  %s1106_s3 = inlined_call_operand.hbm [shape: bf16[128,128], index: 3, kind: input, shape index: {}]   ;;  %s1107_s4 = inlined_call_operand.vmem [shape: f32[1,128], index: 4, kind: input, shape index: {}]   ;;  %s1108_s5 = inlined_call_operand.hbm [shape: bf16[128,128], index: 5, kind: input, shape index: {}]   ;;  %s1109_s6 = inlined_call_operand.vmem [shape: f32[1,128], index: 6, kind: input, shape index: {}]   ;;  %s1110_s7 = inlined_call_operand.hbm [shape: bf16[128,128], index: 7, kind: input, shape index: {}]   ;;  %s1111_s8 = inlined_call_operand.vmem [shape: f32[1,128], index: 8, kind: input, shape index: {}]   ;;  %s1112_s9 = inlined_call_operand.hbm [shape: f32[8,128], index: 9, kind: output, shape index: {}]  }
   0x1   :  { %15 = vsyncpa [#allocation6], 0 }
   0x2   :  { %16 = vsyncpa [#allocation9], 0 }
   0x3   :  { %17 = vsyncpa [#allocation4], 0  ;;  %s907_s30 = smov [#allocation5]   ;;  %s767_s13 = scalar_lea.hbm %s1104_s1, 1024 }
   0x4   :  { %s33_s10 = sshll.u32 %s907_s30, 4  ;;  %p768_p0 = scmp.ne.s32.totalorder %s1104_s1, %s767_s13  ;;  %s34_s10 = int_to_ptr.vmem [resolvable:$true] %s33_s10 }
   0x5   :  { %p771_p1 = scmp.lt.u32.totalorder %s767_s13, %s1104_s1 }
   0x7   :  { %p773_p2 = pnand %p771_p1, %p768_p0 }
   0x9   :  { %776 = shalt.err (!%p773_p2)
}
   0xa   :  { %s777_s18 = scalar_lea.vmem %s34_s10, 1024  ;;  %p782_p4 = scmp.lt.s32.totalorder %s34_s10, %s34_s10 }
   0xb   :  { %p778_p3 = scmp.ne.s32.totalorder %s34_s10, %s777_s18  ;;  %p783_p5 = scmp.lt.s32.totalorder %s777_s18, %s777_s18 }
   0xd   :  { %p784_p6 = por %p783_p5, %p782_p4 }
   0xf   :  { %p785_p7 = pnand %p784_p6, %p778_p3 }
  0x11   :  { %788 = shalt.err (!%p785_p7)
}
  0x12   :  { %s908_s19 = smov 64   ;;  %s909_s20 = smov 4  }
  0x13   :  { %39 = dma.hbm_to_vmem [thread:$0]  %s1104_s1, 1024, %s34_s10, [#allocation6], %s908_s19, %s908_s19, %s909_s20  }
  0x14   :  { %s910_s23 = smov [#allocation8]   ;;  %s911_s25 = smov [#allocation2]  }
  0x15   :  { %s61_s24 = sshll.u32 %s910_s23, 4  ;;  %s24_s26 = sshll.u32 %s911_s25, 4  ;;  %s62_s24 = int_to_ptr.vmem [resolvable:$true] %s61_s24  ;;  %s25_s26 = int_to_ptr.vmem [resolvable:$true] %s24_s26 }
  0x16   :  { %s789_s29 = scalar_lea.hbm %s1108_s5, 1024 }
  0x17   :  { %p790_p8 = scmp.ne.s32.totalorder %s1108_s5, %s789_s29  ;;  %p793_p9 = scmp.lt.u32.totalorder %s789_s29, %s1108_s5 }
  0x19   :  { %p795_p10 = pnand %p793_p9, %p790_p8 }
  0x1b   :  { %798 = shalt.err (!%p795_p10)
}
  0x1c   :  { %s799_s1 = scalar_lea.vmem %s62_s24, 1024  ;;  %p804_p12 = scmp.lt.s32.totalorder %s62_s24, %s62_s24 }
  0x1d   :  { %p800_p11 = scmp.ne.s32.totalorder %s62_s24, %s799_s1  ;;  %p805_p13 = scmp.lt.s32.totalorder %s799_s1, %s799_s1 }
  0x1f   :  { %p806_p0 = por %p805_p13, %p804_p12 }
  0x21   :  { %p807_p1 = pnand %p806_p0, %p800_p11 }
  0x23   :  { %810 = shalt.err (!%p807_p1)
}
  0x24   :  { %67 = dma.hbm_to_vmem [thread:$0]  %s1108_s5, 1024, %s62_s24, [#allocation9], %s908_s19, %s908_s19, %s909_s20  }
  0x25   :  { %s811_s17 = scalar_lea.hbm %s1103_s0, 128 }
  0x26   :  { %p812_p2 = scmp.ne.s32.totalorder %s1103_s0, %s811_s17  ;;  %p815_p3 = scmp.lt.u32.totalorder %s811_s17, %s1103_s0 }
  0x28   :  { %p817_p4 = pnand %p815_p3, %p812_p2 }
  0x2a   :  { %820 = shalt.err (!%p817_p4)
}
  0x2b   :  { %s821_s25 = scalar_lea.vmem %s25_s26, 128  ;;  %p826_p6 = scmp.lt.s32.totalorder %s25_s26, %s25_s26 }
  0x2c   :  { %p822_p5 = scmp.ne.s32.totalorder %s25_s26, %s821_s25  ;;  %p827_p7 = scmp.lt.s32.totalorder %s821_s25, %s821_s25 }
  0x2e   :  { %p828_p8 = por %p827_p7, %p826_p6 }
  0x30   :  { %p829_p9 = pnand %p828_p8, %p822_p5 }
  0x32   :  { %832 = shalt.err (!%p829_p9)
}
  0x33   :  { %27 = dma.hbm_to_vmem [thread:$0]  %s1103_s0, 128, %s25_s26, [#allocation3]  }
  0x34   :  { %s912_s27 = smov [#allocation7]   ;;  %s913_s29 = smov [#allocation10]  }
  0x35   :  { %s47_s28 = sshll.u32 %s912_s27, 4  ;;  %s75_s30 = sshll.u32 %s913_s29, 4  ;;  %s48_s28 = int_to_ptr.vmem [resolvable:$true] %s47_s28  ;;  %s76_s30 = int_to_ptr.vmem [resolvable:$true] %s75_s30 }
  0x36   :  { %s833_s13 = scalar_lea.hbm %s1106_s3, 1024 }
  0x37   :  { %p834_p10 = scmp.ne.s32.totalorder %s1106_s3, %s833_s13  ;;  %p837_p11 = scmp.lt.u32.totalorder %s833_s13, %s1106_s3 }
  0x39   :  { %p839_p12 = pnand %p837_p11, %p834_p10 }
  0x3b   :  { %842 = shalt.err (!%p839_p12)
}
  0x3c   :  { %s843_s0 = scalar_lea.vmem %s48_s28, 1024  ;;  %p848_p0 = scmp.lt.s32.totalorder %s48_s28, %s48_s28 }
  0x3d   :  { %p844_p13 = scmp.ne.s32.totalorder %s48_s28, %s843_s0  ;;  %p849_p1 = scmp.lt.s32.totalorder %s843_s0, %s843_s0 }
  0x3f   :  { %p850_p2 = por %p849_p1, %p848_p0 }
  0x41   :  { %p851_p3 = pnand %p850_p2, %p844_p13 }
  0x43   :  { %854 = shalt.err (!%p851_p3)
}
  0x44   :  { %53 = dma.hbm_to_vmem [thread:$0]  %s1106_s3, 1024, %s48_s28, [#allocation6], %s908_s19, %s908_s19, %s909_s20  }
  0x45   :  { %s855_s21 = scalar_lea.hbm %s1110_s7, 1024 }
  0x46   :  { %p856_p4 = scmp.ne.s32.totalorder %s1110_s7, %s855_s21  ;;  %p859_p5 = scmp.lt.u32.totalorder %s855_s21, %s1110_s7 }
  0x48   :  { %p861_p6 = pnand %p859_p5, %p856_p4 }
  0x4a   :  { %864 = shalt.err (!%p861_p6)
}
  0x4b   :  { %s865_s24 = scalar_lea.vmem %s76_s30, 1024  ;;  %p870_p8 = scmp.lt.s32.totalorder %s76_s30, %s76_s30 }
  0x4c   :  { %p866_p7 = scmp.ne.s32.totalorder %s76_s30, %s865_s24  ;;  %p871_p9 = scmp.lt.s32.totalorder %s865_s24, %s865_s24 }
  0x4e   :  { %p872_p10 = por %p871_p9, %p870_p8 }
  0x50   :  { %p873_p11 = pnand %p872_p10, %p866_p7 }
  0x52   :  { %876 = shalt.err (!%p873_p11)
}
  0x53   :  { %81 = dma.hbm_to_vmem [thread:$0]  %s1110_s7, 1024, %s76_s30, [#allocation9], %s908_s19, %s908_s19, %s909_s20  }
  0x54   :  { %899 = dma.done.wait [#allocation3], 128  }
  0x55   :  { %900 = vsyncadd [#allocation3], 4294967168 }
  0x56   :  { %901 = dma.done.wait [#allocation6], 2048  }
  0x57   :  { %902 = vsyncadd [#allocation6], 4294965248 }
  0x58   :  { %903 = dma.done.wait [#allocation9], 2048  }
  0x59   :  { %904 = vsyncadd [#allocation9], 4294965248  ;;  %v914_v0 = vmov 0.0   ;;  %vm915_vm0 = vmmov 0   ;;  %v733_v1 = vld [vmem:[#allocation5] sm:$0xff]   ;;  %v734_v2 = vld [vmem:[#allocation5 + $0x8] sm:$0xff]  }
  0x5a   :  { %643 = vmatprep.subr.bf16.mxu0 %v914_v0  ;;  %659 = vmatprep.mubr.msk.bf16.mxu0 %vm915_vm0, %v914_v0  ;;  %v735_v3 = vld [vmem:[#allocation5 + $0x10] sm:$0xff]   ;;  %v741_v4 = vld [vmem:[#allocation7] sm:$0xff]   ;;  %v736_v5 = vld [vmem:[#allocation5 + $0x18] sm:$0xff]   ;;  %s916_s11 = smov [#allocation11]  }
  0x5b   :  { %663 = vmatprep.subr.bf16.mxu1 %v914_v0  ;;  %679 = vmatprep.mubr.msk.bf16.mxu1 %vm915_vm0, %v914_v0  ;;  %v742_v6 = vld [vmem:[#allocation7 + $0x8] sm:$0xff]   ;;  %v737_v7 = vld [vmem:[#allocation5 + $0x20] sm:$0xff]   ;;  %v743_v8 = vld [vmem:[#allocation7 + $0x10] sm:$0xff]  }
  0x5c   :  { %644 = vmatpush3.bf16.msra.mxu0 %v733_v1  ;;  %664 = vmatpush3.bf16.msra.mxu1 %v741_v4  ;;  %v738_v9 = vld [vmem:[#allocation5 + $0x28] sm:$0xff]   ;;  %v744_v10 = vld [vmem:[#allocation7 + $0x18] sm:$0xff]   ;;  %v739_v11 = vld [vmem:[#allocation5 + $0x30] sm:$0xff]  }
  0x5d   :  { %645 = vmatprep.subr.bf16.mxu0 %v914_v0  ;;  %665 = vmatprep.subr.bf16.mxu1 %v914_v0  ;;  %v745_v12 = vld [vmem:[#allocation7 + $0x20] sm:$0xff]   ;;  %v740_v13 = vld [vmem:[#allocation5 + $0x38] sm:$0xff]   ;;  %v746_v15 = vld [vmem:[#allocation7 + $0x28] sm:$0xff]  }
  0x5e   :  { %v100_v14 = vld [vmem:[#allocation2] sm:$0xff]  ;;  %v747_v17 = vld [vmem:[#allocation7 + $0x30] sm:$0xff]   ;;  %v749_v19 = vld [vmem:[#allocation8] sm:$0xff]  }
  0x5f   :  { %v101_v16 = vpack.c.bf16 %v100_v14, %v100_v14  ;;  %v748_v18 = vld [vmem:[#allocation7 + $0x38] sm:$0xff]   ;;  %v750_v20 = vld [vmem:[#allocation8 + $0x8] sm:$0xff]   ;;  %v751_v21 = vld [vmem:[#allocation8 + $0x10] sm:$0xff]  }
  0x60   :  { %646 = vmatpush3.bf16.msra.mxu0 %v734_v2  ;;  %666 = vmatpush3.bf16.msra.mxu1 %v742_v6  ;;  %v752_v22 = vld [vmem:[#allocation8 + $0x18] sm:$0xff]   ;;  %v753_v23 = vld [vmem:[#allocation8 + $0x20] sm:$0xff]   ;;  %v754_v24 = vld [vmem:[#allocation8 + $0x28] sm:$0xff]  }
  0x61   :  { %647 = vmatprep.subr.bf16.mxu0 %v914_v0  ;;  %667 = vmatprep.subr.bf16.mxu1 %v914_v0  ;;  %v571_v25 = vld [vmem:[%s1105_s2] ss:$0 sm:$0xff]  ;;  %v755_v33 = vld [vmem:[#allocation8 + $0x30] sm:$0xff]   ;;  %v757_v35 = vld [vmem:[#allocation10] sm:$0xff]  }
  0x62   :  { %v756_v34 = vld [vmem:[#allocation8 + $0x38] sm:$0xff]   ;;  %v758_v36 = vld [vmem:[#allocation10 + $0x8] sm:$0xff]   ;;  %v759_v37 = vld [vmem:[#allocation10 + $0x10] sm:$0xff]  }
  0x63   :  { %v760_v38 = vld [vmem:[#allocation10 + $0x18] sm:$0xff]   ;;  %v761_v39 = vld [vmem:[#allocation10 + $0x20] sm:$0xff]   ;;  %v762_v40 = vld [vmem:[#allocation10 + $0x28] sm:$0xff]  }
  0x64   :  { %648 = vmatpush3.bf16.msra.mxu0 %v735_v3  ;;  %668 = vmatpush3.bf16.msra.mxu1 %v743_v8  ;;  %v580_v41 = vld [vmem:[%s1107_s4] ss:$0 sm:$0xff]  ;;  %v763_v49 = vld [vmem:[#allocation10 + $0x30] sm:$0xff]  }
  0x65   :  { %649 = vmatprep.subr.bf16.mxu0 %v914_v0  ;;  %669 = vmatprep.subr.bf16.mxu1 %v914_v0  ;;  %v764_v50 = vld [vmem:[#allocation10 + $0x38] sm:$0xff]  }
  0x66   :  { %v589_v51 = vld [vmem:[%s1109_s6] ss:$0 sm:$0xff]  ;;  %s560_s6 = sshll.u32 %s916_s11, 4  ;;  %s561_s6 = int_to_ptr.vmem [resolvable:$true] %s560_s6 }
  0x67   :  { %v598_v59 = vld [vmem:[%s1111_s8] ss:$0 sm:$0xff]  ;;  %s877_s12 = scalar_lea.vmem %s561_s6, 128  ;;  %p882_p13 = scmp.lt.s32.totalorder %s561_s6, %s561_s6 }
  0x68   :  { %650 = vmatpush3.bf16.msra.mxu0 %v736_v5  ;;  %670 = vmatpush3.bf16.msra.mxu1 %v744_v10  ;;  %p878_p12 = scmp.ne.s32.totalorder %s561_s6, %s877_s12  ;;  %p883_p0 = scmp.lt.s32.totalorder %s877_s12, %s877_s12 }
  0x69   :  { %651 = vmatprep.subr.bf16.mxu0 %v914_v0  ;;  %671 = vmatprep.subr.bf16.mxu1 %v914_v0 }
  0x6a   :  { %p884_p1 = por %p883_p0, %p882_p13 }
  0x6c   :  { %652 = vmatpush3.bf16.msra.mxu0 %v737_v7  ;;  %672 = vmatpush3.bf16.msra.mxu1 %v745_v12  ;;  %p885_p2 = pnand %p884_p1, %p878_p12 }
  0x6d   :  { %653 = vmatprep.subr.bf16.mxu0 %v914_v0  ;;  %673 = vmatprep.subr.bf16.mxu1 %v914_v0 }
  0x70   :  { %654 = vmatpush3.bf16.msra.mxu0 %v738_v9  ;;  %674 = vmatpush3.bf16.msra.mxu1 %v746_v15 }
  0x71   :  { %655 = vmatprep.subr.bf16.mxu0 %v914_v0  ;;  %675 = vmatprep.subr.bf16.mxu1 %v914_v0 }
  0x74   :  { %656 = vmatpush3.bf16.msra.mxu0 %v739_v11  ;;  %676 = vmatpush3.bf16.msra.mxu1 %v747_v17 }
  0x75   :  { %657 = vmatprep.subr.bf16.mxu0 %v914_v0  ;;  %677 = vmatprep.subr.bf16.mxu1 %v914_v0 }
  0x78   :  { %658 = vmatpush3.bf16.msra.mxu0 %v740_v13  ;;  %678 = vmatpush3.bf16.msra.mxu1 %v748_v18 }
  0x79   :  { %683 = vmatprep.subr.bf16.mxu0 %v914_v0  ;;  %703 = vmatprep.subr.bf16.mxu1 %v914_v0 }
  0x7b   :  { %660 = vmatmul.mubr.bf16.vlgmr.msra.gmra.mrb[0].mxu0 %v101_v16 }
  0x7c   :  { %699 = vmatprep.mubr.msk.bf16.mxu0 %vm915_vm0, %v914_v0  ;;  %684 = vmatpush3.bf16.msra.mxu0 %v749_v19 }
  0x7d   :  { %685 = vmatprep.subr.bf16.mxu0 %v914_v0 }
  0x80   :  { %686 = vmatpush3.bf16.msra.mxu0 %v750_v20 }
  0x81   :  { %687 = vmatprep.subr.bf16.mxu0 %v914_v0 }
  0x84   :  { %688 = vmatpush3.bf16.msra.mxu0 %v751_v21 }
  0x85   :  { %689 = vmatprep.subr.bf16.mxu0 %v914_v0 }
  0x88   :  { %690 = vmatpush3.bf16.msra.mxu0 %v752_v22 }
  0x89   :  { %691 = vmatprep.subr.bf16.mxu0 %v914_v0 }
  0x8c   :  { %692 = vmatpush3.bf16.msra.mxu0 %v753_v23 }
  0x8d   :  { %693 = vmatprep.subr.bf16.mxu0 %v914_v0 }
  0x90   :  { %694 = vmatpush3.bf16.msra.mxu0 %v754_v24 }
  0x91   :  { %695 = vmatprep.subr.bf16.mxu0 %v914_v0 }
  0x94   :  { %696 = vmatpush3.bf16.msra.mxu0 %v755_v33 }
  0x95   :  { %697 = vmatprep.subr.bf16.mxu0 %v914_v0 }
  0x98   :  { %698 = vmatpush3.bf16.msra.mxu0 %v756_v34 }
 0x14e   :  { %v207_v26 = vpop.f32.mrb[0].mxu0 }
 0x14f   :  { %v208_v27 = vadd.f32 %v571_v25, %v207_v26  ;;  %v661_v28 = vpop.f32.mrb[1].mxu0 }
 0x150   :  { %v210_v29 = vpop.f32.mrb[2].mxu0 }
 0x151   :  { %v213_v30 = vmax.f32 %v208_v27, 0.0  ;;  %v662_v31 = vpop.f32.mrb[3].mxu0 }
 0x153   :  { %v214_v32 = vpack.c.bf16 %v213_v30, %v213_v30 }
 0x155   :  { %680 = vmatmul.mubr.bf16.vlgmr.msra.gmra.mrb[0].mxu1 %v214_v32 }
 0x156   :  { %719 = vmatprep.mubr.msk.bf16.mxu1 %vm915_vm0, %v914_v0  ;;  %704 = vmatpush3.bf16.msra.mxu1 %v757_v35 }
 0x157   :  { %705 = vmatprep.subr.bf16.mxu1 %v914_v0 }
 0x15a   :  { %706 = vmatpush3.bf16.msra.mxu1 %v758_v36 }
 0x15b   :  { %707 = vmatprep.subr.bf16.mxu1 %v914_v0 }
 0x15e   :  { %708 = vmatpush3.bf16.msra.mxu1 %v759_v37 }
 0x15f   :  { %709 = vmatprep.subr.bf16.mxu1 %v914_v0 }
 0x162   :  { %710 = vmatpush3.bf16.msra.mxu1 %v760_v38 }
 0x163   :  { %711 = vmatprep.subr.bf16.mxu1 %v914_v0 }
 0x166   :  { %712 = vmatpush3.bf16.msra.mxu1 %v761_v39 }
 0x167   :  { %713 = vmatprep.subr.bf16.mxu1 %v914_v0 }
 0x16a   :  { %714 = vmatpush3.bf16.msra.mxu1 %v762_v40 }
 0x16b   :  { %715 = vmatprep.subr.bf16.mxu1 %v914_v0 }
 0x16e   :  { %716 = vmatpush3.bf16.msra.mxu1 %v763_v49 }
 0x16f   :  { %717 = vmatprep.subr.bf16.mxu1 %v914_v0 }
 0x172   :  { %718 = vmatpush3.bf16.msra.mxu1 %v764_v50 }
 0x228   :  { %v320_v42 = vpop.f32.mrb[0].mxu1 }
 0x229   :  { %v321_v43 = vadd.f32 %v580_v41, %v320_v42  ;;  %v681_v44 = vpop.f32.mrb[1].mxu1 }
 0x22a   :  { %v323_v45 = vpop.f32.mrb[2].mxu1 }
 0x22b   :  { %v326_v46 = vmax.f32 %v321_v43, 0.0  ;;  %v682_v47 = vpop.f32.mrb[3].mxu1 }
 0x22d   :  { %v327_v48 = vpack.c.bf16 %v326_v46, %v326_v46 }
 0x22f   :  { %700 = vmatmul.mubr.bf16.vlgmr.msra.gmra.mrb[4].mxu0 %v327_v48 }
 0x302   :  { %v433_v52 = vpop.f32.mrb[4].mxu0 }
 0x303   :  { %v434_v53 = vadd.f32 %v589_v51, %v433_v52  ;;  %v701_v54 = vpop.f32.mrb[5].mxu0 }
 0x304   :  { %v436_v55 = vpop.f32.mrb[6].mxu0 }
 0x305   :  { %v439_v56 = vmax.f32 %v434_v53, 0.0  ;;  %v702_v57 = vpop.f32.mrb[7].mxu0 }
 0x307   :  { %v440_v58 = vpack.c.bf16 %v439_v56, %v439_v56 }
 0x309   :  { %720 = vmatmul.mubr.bf16.vlgmr.msra.gmra.mrb[4].mxu1 %v440_v58 }
 0x3dc   :  { %v546_v60 = vpop.f32.mrb[4].mxu1 }
 0x3dd   :  { %v547_v61 = vadd.f32 %v598_v59, %v546_v60  ;;  %v721_v62 = vpop.f32.mrb[5].mxu1 }
 0x3de   :  { %v549_v63 = vpop.f32.mrb[6].mxu1 }
 0x3df   :  { %765 = vtanh.f32 %v547_v61  ;;  %v722_v0 = vpop.f32.mrb[7].mxu1 }
 0x3e9   :  { %v766_v1 = vpop.eup %765 }
 0x3ea   :  { %553 = vst [vmem:[#allocation11] sm:$0xff] %v766_v1 }
 0x3eb   :  { %888 = shalt.err (!%p885_p2)
}
 0x3ec   :  { %s889_s1 = scalar_lea.hbm %s1112_s9, 128 }
 0x3ed   :  { %p890_p3 = scmp.ne.s32.totalorder %s1112_s9, %s889_s1  ;;  %p893_p4 = scmp.lt.u32.totalorder %s889_s1, %s1112_s9 }
 0x3ef   :  { %p895_p5 = pnand %p893_p4, %p890_p3 }
 0x3f1   :  { %898 = shalt.err (!%p895_p5)
}
 0x3f2   :  { %563 = dma.vmem_to_hbm [thread:$0]  %s561_s6, 128, %s1112_s9, [#allocation4]  }
 0x3f3   :  { %905 = dma.done.wait [#allocation4], 128  }
 0x3f4   :  { %906 = vsyncadd [#allocation4], 4294967168 }
 0x3f5   :  { %567 = vsyncpa [#allocation3], 1 }
 0x3f6   :  { %568 = vsyncpa [#allocation6], 1 }
 0x3f7   :  { %569 = vsyncpa [#allocation9], 1 }
 0x3f8   :  { %570 = vsyncpa [#allocation4], 1 }

</bundles_post_ra>
